<compile_context>
chip_gen: v7x
topology: tpu7x:2x2x1
jax: 0.10.0
libtpu: 0.0.40
codegen_flags: <defaults>
</compile_context>

<pallas_src>
import functools

import jax
import jax.numpy as jnp
from jax.experimental import pallas as pl
from jax.experimental.pallas import tpu as pltpu


def output_embedding_kernel(mu_ref, std_ref, val_ref,
                            w1m_ref, w1s_ref, w1v_ref, b1_ref,
                            w2_ref, b2_ref, w3_ref, b3_ref,
                            o_ref):
    # mu/std: (TN, A) bf16, val: (TN, V) bf16
    # w1m/w1s: (A, H1) bf16, w1v: (V=1, H1) bf16, b1: (1, H1) f32
    # w2: (H1, H2) bf16, b2: (1, H2) f32
    # w3: (H2, D_pad) bf16, b3: (1, D_pad) f32
    # o:  (TN, D_pad) f32   (lane-dense: D_pad is a multiple of 128)

    # ---- layer 1: fused "concat" as partial products summed (MXU + VPU) ----
    h1 = jnp.dot(mu_ref[...], w1m_ref[...], preferred_element_type=jnp.float32)
    h1 = h1 + jnp.dot(std_ref[...], w1s_ref[...],
                      preferred_element_type=jnp.float32)
    # value_size == 1: outer-product contribution done on the VPU via broadcast.
    h1 = h1 + val_ref[...].astype(jnp.float32) * w1v_ref[...].astype(jnp.float32)
    h1 = jnp.maximum(h1 + b1_ref[...], 0.0)            # f32 bias + ReLU
    h1 = h1.astype(w2_ref.dtype)                        # bf16 operand for MXU

    # ---- layer 2 ----
    h2 = jnp.dot(h1, w2_ref[...], preferred_element_type=jnp.float32)
    h2 = jnp.maximum(h2 + b2_ref[...], 0.0)
    h2 = h2.astype(w3_ref.dtype)

    # ---- layer 3 (out_nn, lane-padded) ----
    y = jnp.dot(h2, w3_ref[...], preferred_element_type=jnp.float32)
    o_ref[...] = (y + b3_ref[...]).astype(o_ref.dtype)


@functools.partial(jax.jit, static_argnames=("d_model", "tn"))
def output_embedding_forward(action_mu, action_std, value, params, d_model,
                             tn=256):
    """action_mu/std: (B, S, A), value: (B, S, V). Returns (B, S, d_model).

    tn: max rows (tokens) per grid step. 256 suits v6e/v7x MXU granularity;
    the effective tile is clamped to the (8-aligned) token count so small
    inputs don't pay row padding. VMEM per step is a few hundred KiB, far
    under all scoped defaults (16/32 MiB).
    """
    B, S, A = action_mu.shape
    V = value.shape[2]
    N = B * S

    w1, b1, w2, b2, w3, b3 = params
    F_in, H1 = w1.shape
    H2 = w2.shape[1]
    assert F_in == 2 * A + V

    # Clamp the row tile for small N (avoids padding 16 tokens up to 256).
    tn_eff = min(tn, max(8, pl.cdiv(N, 8) * 8))

    # Flatten (B, S) -> rows; bf16 matmul operands (f32 accumulation in-kernel).
    mu2 = action_mu.reshape(N, A).astype(jnp.bfloat16)
    std2 = action_std.reshape(N, A).astype(jnp.bfloat16)
    val2 = value.reshape(N, V).astype(jnp.bfloat16)

    # Pad rows to a multiple of the row tile.
    n_pad = pl.cdiv(N, tn_eff) * tn_eff
    if n_pad != N:
        pad = n_pad - N
        mu2 = jnp.pad(mu2, ((0, pad), (0, 0)))
        std2 = jnp.pad(std2, ((0, pad), (0, 0)))
        val2 = jnp.pad(val2, ((0, pad), (0, 0)))

    # Lane-dense output: pad d_model up to a 128 multiple (zero cols in W3/b3).
    d_pad = pl.cdiv(d_model, 128) * 128
    if d_pad != d_model:
        w3 = jnp.pad(w3, ((0, 0), (0, d_pad - d_model)))
        b3 = jnp.pad(b3, ((0, 0), (0, d_pad - d_model)))

    # Split W1 by input block so the concat never materializes.
    w1m = w1[:A, :].astype(jnp.bfloat16)
    w1s = w1[A:2 * A, :].astype(jnp.bfloat16)
    w1v = w1[2 * A:, :].astype(jnp.bfloat16)
    w2b = w2.astype(jnp.bfloat16)
    w3b = w3.astype(jnp.bfloat16)
    b1f = b1.astype(jnp.float32)
    b2f = b2.astype(jnp.float32)
    b3f = b3.astype(jnp.float32)

    grid = (n_pad // tn_eff,)

    flops = 2 * n_pad * (F_in * H1 + H1 * H2 + H2 * d_pad)
    bytes_accessed = (
        2 * n_pad * (2 * A + V)                       # bf16 inputs
        + 4 * n_pad * d_pad                           # f32 output
        + 2 * (F_in * H1 + H1 * H2 + H2 * d_pad)      # bf16 weights
        + 4 * (H1 + H2 + d_pad))                      # f32 biases

    const = lambda i: (0, 0)     # weights/biases stay resident across the grid
    rows = lambda i: (i, 0)      # row-tiled activations

    out = pl.pallas_call(
        output_embedding_kernel,
        out_shape=jax.ShapeDtypeStruct((n_pad, d_pad), jnp.float32),
        grid_spec=pl.GridSpec(
            grid=grid,
            in_specs=[
                pl.BlockSpec((tn_eff, A), rows),      # action_mu
                pl.BlockSpec((tn_eff, A), rows),      # action_std
                pl.BlockSpec((tn_eff, V), rows),      # value
                pl.BlockSpec((A, H1), const),         # W1[:A]
                pl.BlockSpec((A, H1), const),         # W1[A:2A]
                pl.BlockSpec((V, H1), const),         # W1[2A:]
                pl.BlockSpec((1, H1), const),         # b1
                pl.BlockSpec((H1, H2), const),        # W2
                pl.BlockSpec((1, H2), const),         # b2
                pl.BlockSpec((H2, d_pad), const),     # W3 (lane-padded)
                pl.BlockSpec((1, d_pad), const),      # b3 (lane-padded)
            ],
            out_specs=pl.BlockSpec((tn_eff, d_pad), rows),
        ),
        compiler_params=pltpu.CompilerParams(
            dimension_semantics=("parallel",)),
        cost_estimate=pl.CostEstimate(
            flops=flops, transcendentals=0, bytes_accessed=bytes_accessed),
    )(mu2, std2, val2, w1m, w1s, w1v, b1f, w2b, b2f, w3b, b3f)

    # Strip row + lane padding, restore (B, S, d_model).
    return out[:N, :d_model].reshape(B, S, d_model)


def init_params(key, in_size, units, d_model):
    """Deterministic init mimicking nn.Linear default (uniform +/- 1/sqrt(fan_in))."""
    sizes = [in_size] + list(units) + [d_model]
    params = []
    for i in range(len(sizes) - 1):
        fan_in, fan_out = sizes[i], sizes[i + 1]
        key, kw, kb = jax.random.split(key, 3)
        bound = 1.0 / jnp.sqrt(fan_in)
        w = jax.random.uniform(kw, (fan_in, fan_out), jnp.float32, -bound, bound)
        b = jax.random.uniform(kb, (1, fan_out), jnp.float32, -bound, bound)
        params.extend([w, b])
    return tuple(params)


def reference_forward(action_mu, action_std, value, params, d_model):
    w1, b1, w2, b2, w3, b3 = params
    x = jnp.concatenate([action_mu, action_std, value], axis=2)
    B, S, _ = x.shape
    x = x.reshape(B * S, -1).astype(jnp.float32)
    h = jnp.maximum(x @ w1 + b1, 0.0)
    h = jnp.maximum(h @ w2 + b2, 0.0)
    y = h @ w3 + b3
    return y.reshape(B, S, d_model)


if __name__ == "__main__":
    # Small config consistent with the module:
    #   action_size A = 4, value_size V = 1  -> mlp_input = 2*4 + 1 = 9
    #   encoder mlp units = [256, 128], activation relu
    #   d_model = 32, batch = 2, seq_len = 8
    B, S, A, V = 2, 8, 4, 1
    d_model = 32
    units = (256, 128)
    in_size = 2 * A + V

    key = jax.random.PRNGKey(0)
    key, k_mu, k_std, k_val, k_par = jax.random.split(key, 5)
    action_mu = jax.random.normal(k_mu, (B, S, A), jnp.float32)
    action_std = jax.random.uniform(k_std, (B, S, A), jnp.float32, 0.1, 1.0)
    value = jax.random.normal(k_val, (B, S, V), jnp.float32)

    params = init_params(k_par, in_size, units, d_model)

    out = output_embedding_forward(action_mu, action_std, value, params, d_model)
    out = jax.block_until_ready(out)

    ref = reference_forward(action_mu, action_std, value, params, d_model)
    assert out.shape == (B, S, d_model)
    # bf16 matmul operands (f32 accumulation) -> relaxed tolerance vs f32 reference.
    assert jnp.allclose(out, ref, atol=3e-2, rtol=3e-2), "mismatch vs JAX reference"

    print("KERNEL_OK")
</pallas_src>

<mosaic_0001>
module attributes {stable_mosaic.version = 11 : i64} {
  func.func @output_embedding_kernel(%arg0: i32, %arg1: memref<16x4xbf16, #tpu.memory_space<vmem>>, %arg2: memref<16x4xbf16, #tpu.memory_space<vmem>>, %arg3: memref<16x1xbf16, #tpu.memory_space<vmem>>, %arg4: memref<4x256xbf16, #tpu.memory_space<vmem>>, %arg5: memref<4x256xbf16, #tpu.memory_space<vmem>>, %arg6: memref<1x256xbf16, #tpu.memory_space<vmem>>, %arg7: memref<1x256xf32, #tpu.memory_space<vmem>>, %arg8: memref<256x128xbf16, #tpu.memory_space<vmem>>, %arg9: memref<1x128xf32, #tpu.memory_space<vmem>>, %arg10: memref<128x128xbf16, #tpu.memory_space<vmem>>, %arg11: memref<1x128xf32, #tpu.memory_space<vmem>>, %arg12: memref<16x128xf32, #tpu.memory_space<vmem>>) attributes {dimension_semantics = [#tpu.dimension_semantics<parallel>], iteration_bounds = array<i64: 1>, scalar_prefetch = 0 : i64, scratch_operands = 0 : i64, tpu.core_type = #tpu.core_type<tc>, window_params = [{transform_indices = @transform_0, window_bounds = array<i64: 16, 4>}, {transform_indices = @transform_1, window_bounds = array<i64: 16, 4>}, {transform_indices = @transform_2, window_bounds = array<i64: 16, 1>}, {pipeline_mode = #tpu.pipeline_mode<synchronous>, transform_indices = @transform_3, window_bounds = array<i64: 4, 256>}, {pipeline_mode = #tpu.pipeline_mode<synchronous>, transform_indices = @transform_4, window_bounds = array<i64: 4, 256>}, {pipeline_mode = #tpu.pipeline_mode<synchronous>, transform_indices = @transform_5, window_bounds = array<i64: 1, 256>}, {pipeline_mode = #tpu.pipeline_mode<synchronous>, transform_indices = @transform_6, window_bounds = array<i64: 1, 256>}, {pipeline_mode = #tpu.pipeline_mode<synchronous>, transform_indices = @transform_7, window_bounds = array<i64: 256, 128>}, {pipeline_mode = #tpu.pipeline_mode<synchronous>, transform_indices = @transform_8, window_bounds = array<i64: 1, 128>}, {pipeline_mode = #tpu.pipeline_mode<synchronous>, transform_indices = @transform_9, window_bounds = array<i64: 128, 128>}, {pipeline_mode = #tpu.pipeline_mode<synchronous>, transform_indices = @transform_10, window_bounds = array<i64: 1, 128>}, {transform_indices = @transform_11, window_bounds = array<i64: 16, 128>}]} {
    %c0 = arith.constant 0 : index
    %c0_0 = arith.constant 0 : index
    %0 = vector.load %arg1[%c0, %c0_0] : memref<16x4xbf16, #tpu.memory_space<vmem>>, vector<16x4xbf16>
    %c0_1 = arith.constant 0 : index
    %c0_2 = arith.constant 0 : index
    %1 = vector.load %arg4[%c0_1, %c0_2] : memref<4x256xbf16, #tpu.memory_space<vmem>>, vector<4x256xbf16>
    %cst = arith.constant dense<0.000000e+00> : vector<16x256xf32>
    %2 = tpu.matmul %0, %1, %cst {dimension_numbers = #tpu.dot_dimension_numbers<[1], [0], [0], [1], [0, 0, 1, 1], [], []>} : vector<16x4xbf16>, vector<4x256xbf16>, vector<16x256xf32> -> vector<16x256xf32>
    %c0_3 = arith.constant 0 : index
    %c0_4 = arith.constant 0 : index
    %3 = vector.load %arg2[%c0_3, %c0_4] : memref<16x4xbf16, #tpu.memory_space<vmem>>, vector<16x4xbf16>
    %c0_5 = arith.constant 0 : index
    %c0_6 = arith.constant 0 : index
    %4 = vector.load %arg5[%c0_5, %c0_6] : memref<4x256xbf16, #tpu.memory_space<vmem>>, vector<4x256xbf16>
    %cst_7 = arith.constant dense<0.000000e+00> : vector<16x256xf32>
    %5 = tpu.matmul %3, %4, %cst_7 {dimension_numbers = #tpu.dot_dimension_numbers<[1], [0], [0], [1], [0, 0, 1, 1], [], []>} : vector<16x4xbf16>, vector<4x256xbf16>, vector<16x256xf32> -> vector<16x256xf32>
    %6 = arith.addf %2, %5 : vector<16x256xf32>
    %c0_8 = arith.constant 0 : index
    %c0_9 = arith.constant 0 : index
    %7 = vector.load %arg3[%c0_8, %c0_9] : memref<16x1xbf16, #tpu.memory_space<vmem>>, vector<16x1xbf16>
    %8 = arith.extf %7 : vector<16x1xbf16> to vector<16x1xf32>
    %c0_10 = arith.constant 0 : index
    %c0_11 = arith.constant 0 : index
    %9 = vector.load %arg6[%c0_10, %c0_11] : memref<1x256xbf16, #tpu.memory_space<vmem>>, vector<1x256xbf16>
    %10 = arith.extf %9 : vector<1x256xbf16> to vector<1x256xf32>
    %11 = vector.broadcast %8 : vector<16x1xf32> to vector<16x256xf32>
    %12 = vector.broadcast %10 : vector<1x256xf32> to vector<16x256xf32>
    %13 = arith.mulf %11, %12 : vector<16x256xf32>
    %14 = arith.addf %6, %13 : vector<16x256xf32>
    %c0_12 = arith.constant 0 : index
    %c0_13 = arith.constant 0 : index
    %15 = vector.load %arg7[%c0_12, %c0_13] : memref<1x256xf32, #tpu.memory_space<vmem>>, vector<1x256xf32>
    %16 = vector.broadcast %15 : vector<1x256xf32> to vector<16x256xf32>
    %17 = arith.addf %14, %16 : vector<16x256xf32>
    %cst_14 = arith.constant 0.000000e+00 : f32
    %18 = vector.broadcast %cst_14 : f32 to vector<16x256xf32>
    %19 = arith.maximumf %17, %18 : vector<16x256xf32>
    %20 = arith.truncf %19 : vector<16x256xf32> to vector<16x256xbf16>
    %c0_15 = arith.constant 0 : index
    %c0_16 = arith.constant 0 : index
    %21 = vector.load %arg8[%c0_15, %c0_16] : memref<256x128xbf16, #tpu.memory_space<vmem>>, vector<256x128xbf16>
    %cst_17 = arith.constant dense<0.000000e+00> : vector<16x128xf32>
    %22 = tpu.matmul %20, %21, %cst_17 {dimension_numbers = #tpu.dot_dimension_numbers<[1], [0], [0], [1], [0, 0, 1, 1], [], []>} : vector<16x256xbf16>, vector<256x128xbf16>, vector<16x128xf32> -> vector<16x128xf32>
    %c0_18 = arith.constant 0 : index
    %c0_19 = arith.constant 0 : index
    %23 = vector.load %arg9[%c0_18, %c0_19] : memref<1x128xf32, #tpu.memory_space<vmem>>, vector<1x128xf32>
    %24 = vector.broadcast %23 : vector<1x128xf32> to vector<16x128xf32>
    %25 = arith.addf %22, %24 : vector<16x128xf32>
    %cst_20 = arith.constant 0.000000e+00 : f32
    %26 = vector.broadcast %cst_20 : f32 to vector<16x128xf32>
    %27 = arith.maximumf %25, %26 : vector<16x128xf32>
    %28 = arith.truncf %27 : vector<16x128xf32> to vector<16x128xbf16>
    %c0_21 = arith.constant 0 : index
    %c0_22 = arith.constant 0 : index
    %29 = vector.load %arg10[%c0_21, %c0_22] : memref<128x128xbf16, #tpu.memory_space<vmem>>, vector<128x128xbf16>
    %cst_23 = arith.constant dense<0.000000e+00> : vector<16x128xf32>
    %30 = tpu.matmul %28, %29, %cst_23 {dimension_numbers = #tpu.dot_dimension_numbers<[1], [0], [0], [1], [0, 0, 1, 1], [], []>} : vector<16x128xbf16>, vector<128x128xbf16>, vector<16x128xf32> -> vector<16x128xf32>
    %c0_24 = arith.constant 0 : index
    %c0_25 = arith.constant 0 : index
    %31 = vector.load %arg11[%c0_24, %c0_25] : memref<1x128xf32, #tpu.memory_space<vmem>>, vector<1x128xf32>
    %32 = vector.broadcast %31 : vector<1x128xf32> to vector<16x128xf32>
    %33 = arith.addf %30, %32 : vector<16x128xf32>
    %c0_26 = arith.constant 0 : index
    %c0_27 = arith.constant 0 : index
    %34 = vector.load %arg12[%c0_26, %c0_27] : memref<16x128xf32, #tpu.memory_space<vmem>>, vector<16x128xf32>
    tpu.vector_store %arg12[%c0_26, %c0_27], %33 {strides = array<i32>} : memref<16x128xf32, #tpu.memory_space<vmem>>, vector<16x128xf32>,
    return
  }
  func.func @transform_0(%arg0: i32) -> (i32, i32) {
    %c0_i32 = arith.constant 0 : i32
    %c0_i32_0 = arith.constant 0 : i32
    return %arg0, %c0_i32 : i32, i32
  }
  func.func @transform_1(%arg0: i32) -> (i32, i32) {
    %c0_i32 = arith.constant 0 : i32
    %c0_i32_0 = arith.constant 0 : i32
    return %arg0, %c0_i32 : i32, i32
  }
  func.func @transform_2(%arg0: i32) -> (i32, i32) {
    %c0_i32 = arith.constant 0 : i32
    %c0_i32_0 = arith.constant 0 : i32
    return %arg0, %c0_i32 : i32, i32
  }
  func.func @transform_3(%arg0: i32) -> (i32, i32) {
    %c0_i32 = arith.constant 0 : i32
    %c0_i32_0 = arith.constant 0 : i32
    %c0_i32_1 = arith.constant 0 : i32
    return %c0_i32, %c0_i32_0 : i32, i32
  }
  func.func @transform_4(%arg0: i32) -> (i32, i32) {
    %c0_i32 = arith.constant 0 : i32
    %c0_i32_0 = arith.constant 0 : i32
    %c0_i32_1 = arith.constant 0 : i32
    return %c0_i32, %c0_i32_0 : i32, i32
  }
  func.func @transform_5(%arg0: i32) -> (i32, i32) {
    %c0_i32 = arith.constant 0 : i32
    %c0_i32_0 = arith.constant 0 : i32
    %c0_i32_1 = arith.constant 0 : i32
    return %c0_i32, %c0_i32_0 : i32, i32
  }
  func.func @transform_6(%arg0: i32) -> (i32, i32) {
    %c0_i32 = arith.constant 0 : i32
    %c0_i32_0 = arith.constant 0 : i32
    %c0_i32_1 = arith.constant 0 : i32
    return %c0_i32, %c0_i32_0 : i32, i32
  }
  func.func @transform_7(%arg0: i32) -> (i32, i32) {
    %c0_i32 = arith.constant 0 : i32
    %c0_i32_0 = arith.constant 0 : i32
    %c0_i32_1 = arith.constant 0 : i32
    return %c0_i32, %c0_i32_0 : i32, i32
  }
  func.func @transform_8(%arg0: i32) -> (i32, i32) {
    %c0_i32 = arith.constant 0 : i32
    %c0_i32_0 = arith.constant 0 : i32
    %c0_i32_1 = arith.constant 0 : i32
    return %c0_i32, %c0_i32_0 : i32, i32
  }
  func.func @transform_9(%arg0: i32) -> (i32, i32) {
    %c0_i32 = arith.constant 0 : i32
    %c0_i32_0 = arith.constant 0 : i32
    %c0_i32_1 = arith.constant 0 : i32
    return %c0_i32, %c0_i32_0 : i32, i32
  }
  func.func @transform_10(%arg0: i32) -> (i32, i32) {
    %c0_i32 = arith.constant 0 : i32
    %c0_i32_0 = arith.constant 0 : i32
    %c0_i32_1 = arith.constant 0 : i32
    return %c0_i32, %c0_i32_0 : i32, i32
  }
  func.func @transform_11(%arg0: i32) -> (i32, i32) {
    %c0_i32 = arith.constant 0 : i32
    %c0_i32_0 = arith.constant 0 : i32
    return %arg0, %c0_i32 : i32, i32
  }
}

</mosaic_0001>

<bundles_post_ra>
// kernel: output_embedding_forward.1
= control target key start
LH: loop header
LB: loop body
LE: loop exit
PB: predicated region body
PF: predicated region fallthrough
CT: control target
= control target key end

     0   :  { %vm63_vm0 = vcmask 1041408   ;;  %v669_v1 = vmov 0   ;;  %vm59_vm1 = vcmask 31744   ;;  %v670_v29 = vmov 0.0   ;;  %s850_s4 = inlined_call_operand.vmem [shape: bf16[4,256], index: 4, kind: input, shape index: {}]   ;;  %s851_s3 = inlined_call_operand.vmem [shape: bf16[4,256], index: 3, kind: input, shape index: {}]   ;;  %s852_s1 = inlined_call_operand.vmem [shape: bf16[16,4], index: 1, kind: input, shape index: {}]   ;;  %s853_s0 = inlined_call_operand.vmem [shape: bf16[16,4], index: 0, kind: input, shape index: {}]   ;;  %s854_s2 = inlined_call_operand.vmem [shape: bf16[16,1], index: 2, kind: input, shape index: {}]   ;;  %s855_s7 = inlined_call_operand.vmem [shape: bf16[256,128], index: 7, kind: input, shape index: {}]   ;;  %s856_s9 = inlined_call_operand.vmem [shape: bf16[128,128], index: 9, kind: input, shape index: {}]   ;;  %s857_s5 = inlined_call_operand.vmem [shape: bf16[1,256], index: 5, kind: input, shape index: {}]   ;;  %s858_s6 = inlined_call_operand.vmem [shape: f32[1,256], index: 6, kind: input, shape index: {}]   ;;  %s859_s8 = inlined_call_operand.vmem [shape: f32[1,128], index: 8, kind: input, shape index: {}]   ;;  %s860_s10 = inlined_call_operand.vmem [shape: f32[1,128], index: 10, kind: input, shape index: {}]   ;;  %s861_s11 = inlined_call_operand.vmem [shape: f32[16,128], index: 11, kind: output, shape index: {}]  }
   0x1   :  { %v542_v0 = vld.sshfl [vmem:[%s850_s4] sm:$0x33 pattern:$0x76325410]  ;;  %102 = vmatprep.mubr.bf16.mxu1 %v669_v1  ;;  %168 = vmatprep.mubr.bf16.mxu0 %v669_v1  ;;  %v647_v15 = vld [vmem:[%s855_s7 + $0x48] sm:$0xff]   ;;  %v649_v17 = vld [vmem:[%s855_s7 + $0x50] sm:$0xff]   ;;  %v196_v35 = vlaneseq }
   0x2   :  { %v58_v2 = vcombine.high %v542_v0, %v542_v0  ;;  %v546_v3 = vld.sshfl [vmem:[%s851_s3] sm:$0x33 pattern:$0x76325410]  ;;  %v65_v4 = vsel %vm63_vm0, %v542_v0, 0  ;;  %637 = vset.pattern.permute.xlu0 %v669_v1  ;;  %v648_v16 = vld [vmem:[%s855_s7 + $0x8] sm:$0xff]  }
   0x3   :  { %v643_v5 = vld [vmem:[%s852_s1] sm:$0xff]   ;;  %v126_v6 = vcombine.high %v546_v3, %v546_v3  ;;  %v131_v7 = vsel %vm63_vm0, %v546_v3, 0  ;;  %v650_v18 = vld [vmem:[%s855_s7 + $0x10] sm:$0xff]   ;;  %v651_v19 = vld [vmem:[%s855_s7 + $0x58] sm:$0xff]   ;;  %v197_v36 = vshrl.u32 %v196_v35, 7  ;;  %vm671_vm2 = vmmov 0  }
   0x4   :  { %v644_v8 = vld [vmem:[%s853_s0] sm:$0xff]   ;;  %543 = vmatprep.subr.msk.bf16.mxu1 %vm63_vm0, %v58_v2  ;;  %v652_v20 = vld [vmem:[%s855_s7 + $0x18] sm:$0xff]   ;;  %v655_v23 = vld [vmem:[%s855_s7 + $0x68] sm:$0xff]  }
   0x5   :  { %v576_v9 = vld [vmem:[%s854_s2] sm:$0xff]   ;;  %547 = vmatprep.subr.msk.bf16.mxu0 %vm63_vm0, %v126_v6  ;;  %71 = vmatpush1.bf16.msra.mxu1 %v65_v4  ;;  %v656_v24 = vld [vmem:[%s855_s7 + $0x28] sm:$0xff]   ;;  %v657_v25 = vld [vmem:[%s855_s7 + $0x70] sm:$0xff]   ;;  %v198_v39 = vsub.s32 0, %v197_v36  ;;  %v202_v40 = vsub.s32 2, %v197_v36  ;;  %v230_v49 = vsub.s32 1, %v197_v36 }
   0x6   :  { %v577_v10 = vunpack.c.l.bf16 %v576_v9  ;;  %v578_v11 = vunpack.c.h.bf16 %v576_v9  ;;  %v645_v12 = vld [vmem:[%s855_s7 + $0x40] sm:$0xff]   ;;  %137 = vmatpush1.bf16.msra.mxu0 %v131_v7  ;;  %v658_v26 = vld [vmem:[%s855_s7 + $0x30] sm:$0xff]   ;;  %v659_v27 = vld [vmem:[%s855_s7 + $0x78] sm:$0xff]  }
   0x7   :  { %v646_v13 = vld [vmem:[%s855_s7] sm:$0xff]   ;;  %579 = vmatprep.subr.bf16.mxu1 %v645_v12  ;;  %v660_v28 = vld [vmem:[%s855_s7 + $0x38] sm:$0xff]   ;;  %610 = vmatprep.subr.bf16.mxu0 %v670_v29  ;;  %v662_v31 = vld [vmem:[%s856_s9 + $0x8] sm:$0xff]  }
   0x8   :  { %v638_v14 = vpack.i.bf16 %v578_v11, %v577_v10  ;;  %544 = vmatmul.mubr.msk.bf16.vlgmr.msra.gmra.mrb[0].mxu1 %vm59_vm1, %v643_v5  ;;  %v653_v21 = vld [vmem:[%s855_s7 + $0x60] sm:$0xff]   ;;  %v663_v32 = vld [vmem:[%s856_s9 + $0x10] sm:$0xff]   ;;  %v664_v33 = vld [vmem:[%s856_s9 + $0x18] sm:$0xff]  }
   0x9   :  { %548 = vmatmul.mubr.msk.bf16.vlgmr.msra.gmra.mrb[0].mxu0 %vm59_vm1, %v644_v8  ;;  %580 = vmatpush3.bf16.msra.mxu1 %v646_v13  ;;  %v654_v22 = vld [vmem:[%s855_s7 + $0x20] sm:$0xff]  }
   0xa   :  { %639 = vperm.xlu0 %637, %v638_v14   ;;  %581 = vmatprep.subr.bf16.mxu1 %v647_v15  ;;  %v661_v30 = vld [vmem:[%s856_s9] sm:$0xff]  }
   0xb   :  { %611 = vmatpush3.bf16.msra.mxu0 %v661_v30  ;;  %v665_v34 = vld [vmem:[%s856_s9 + $0x20] sm:$0xff]   ;;  %626 = vmatprep.mubr.msk.bf16.mxu0 %vm671_vm2, %v670_v29 }
   0xc   :  { %612 = vmatprep.subr.bf16.mxu0 %v670_v29  ;;  %v183_v37 = vld [vmem:[%s857_s5] sm:$0x3] }
   0xd   :  { %582 = vmatpush3.bf16.msra.mxu1 %v648_v16  ;;  %v184_v38 = vunpack.c.l.bf16 %v183_v37  ;;  %v222_v48 = vld [vmem:[%s858_s6] sm:$0x3] }
   0xe   :  { %583 = vmatprep.subr.bf16.mxu1 %v649_v17  ;;  %v227_v57 = vrot.slane %v222_v48, %v198_v39  ;;  %v231_v62 = vrot.slane %v222_v48, %v230_v49 }
   0xf   :  { %613 = vmatpush3.bf16.msra.mxu0 %v662_v31  ;;  %v199_v41 = vrot.slane %v184_v38, %v198_v39  ;;  %v203_v42 = vrot.slane %v184_v38, %v202_v40 }
  0x10   :  { %614 = vmatprep.subr.bf16.mxu0 %v670_v29 }
  0x11   :  { %584 = vmatpush3.bf16.msra.mxu1 %v650_v18  ;;  %v209_v44 = vrot.slane %v199_v41, %v198_v39  ;;  %v213_v46 = vrot.slane %v203_v42, %v198_v39  ;;  %v666_v18 = vld [vmem:[%s856_s9 + $0x28] sm:$0xff]  }
  0x12   :  { %585 = vmatprep.subr.bf16.mxu1 %v651_v19  ;;  %v667_v19 = vld [vmem:[%s856_s9 + $0x30] sm:$0xff]  }
  0x13   :  { %615 = vmatpush3.bf16.msra.mxu0 %v663_v32 }
  0x14   :  { %616 = vmatprep.subr.bf16.mxu0 %v670_v29 }
  0x15   :  { %586 = vmatpush3.bf16.msra.mxu1 %v652_v20  ;;  %v668_v20 = vld [vmem:[%s856_s9 + $0x38] sm:$0xff]  }
  0x16   :  { %587 = vmatprep.subr.bf16.mxu1 %v653_v21 }
  0x17   :  { %617 = vmatpush3.bf16.msra.mxu0 %v664_v33 }
  0x18   :  { %618 = vmatprep.subr.bf16.mxu0 %v670_v29 }
  0x19   :  { %588 = vmatpush3.bf16.msra.mxu1 %v654_v22  ;;  %v549_v22 = vld [vmem:[%s859_s8] ss:$0 sm:$0xff] }
  0x1a   :  { %589 = vmatprep.subr.bf16.mxu1 %v655_v23 }
  0x1b   :  { %619 = vmatpush3.bf16.msra.mxu0 %v665_v34 }
  0x1c   :  { %620 = vmatprep.subr.bf16.mxu0 %v670_v29 }
  0x1d   :  { %590 = vmatpush3.bf16.msra.mxu1 %v656_v24 }
  0x1e   :  { %591 = vmatprep.subr.bf16.mxu1 %v657_v25 }
  0x1f   :  { %621 = vmatpush3.bf16.msra.mxu0 %v666_v18 }
  0x20   :  { %622 = vmatprep.subr.bf16.mxu0 %v670_v29 }
  0x21   :  { %592 = vmatpush3.bf16.msra.mxu1 %v658_v26 }
  0x22   :  { %593 = vmatprep.subr.bf16.mxu1 %v659_v27 }
  0x23   :  { %623 = vmatpush3.bf16.msra.mxu0 %v667_v19 }
  0x24   :  { %624 = vmatprep.subr.bf16.mxu0 %v670_v29  ;;  %v566_v29 = vld [vmem:[%s860_s10] ss:$0 sm:$0xff] }
  0x25   :  { %594 = vmatpush3.bf16.msra.mxu1 %v660_v28 }
  0x27   :  { %625 = vmatpush3.bf16.msra.mxu0 %v668_v20 }
  0x89   :  { %v640_v43 = vpop.permute.xlu0 %639 }
  0x8a   :  { %v641_v45 = vunpack.i.l.bf16 %v640_v43  ;;  %v642_v47 = vunpack.i.h.bf16 %v640_v43 }
  0x8c   :  { %v214_v50 = vmul.f32 %v641_v45, %v209_v44  ;;  %v215_v52 = vmul.f32 %v641_v45, %v213_v46  ;;  %v216_v55 = vmul.f32 %v642_v47, %v209_v44  ;;  %v217_v60 = vmul.f32 %v642_v47, %v213_v46 }
  0xdb   :  { %v104_v51 = vpop.f32.mrb[0].mxu1 }
  0xdc   :  { %v170_v53 = vpop.f32.mrb[0].mxu0  ;;  %v106_v54 = vpop.f32.mrb[1].mxu1 }
  0xdd   :  { %v171_v56 = vadd.f32 %v170_v53, %v104_v51  ;;  %v172_v58 = vpop.f32.mrb[1].mxu0  ;;  %v108_v59 = vpop.f32.mrb[2].mxu1 }
  0xde   :  { %v173_v61 = vadd.f32 %v172_v58, %v106_v54  ;;  %v174_v63 = vpop.f32.mrb[2].mxu0  ;;  %v110_v0 = vpop.f32.mrb[3].mxu1 }
  0xdf   :  { %v218_v1 = vadd.f32 %v214_v50, %v171_v56  ;;  %v175_v2 = vadd.f32 %v174_v63, %v108_v59  ;;  %v176_v3 = vpop.f32.mrb[3].mxu0 }
  0xe0   :  { %v219_v4 = vadd.f32 %v215_v52, %v173_v61  ;;  %v177_v5 = vadd.f32 %v176_v3, %v110_v0 }
  0xe1   :  { %v234_v6 = vadd.f32 %v227_v57, %v218_v1  ;;  %v220_v7 = vadd.f32 %v216_v55, %v175_v2 }
  0xe2   :  { %v235_v8 = vadd.f32 %v231_v62, %v219_v4  ;;  %v221_v9 = vadd.f32 %v217_v60, %v177_v5 }
  0xe3   :  { %v236_v10 = vadd.f32 %v227_v57, %v220_v7  ;;  %v238_v12 = vmax.f32 %v234_v6, 0.0 }
  0xe4   :  { %v237_v11 = vadd.f32 %v231_v62, %v221_v9  ;;  %v239_v14 = vmax.f32 %v235_v8, 0.0 }
  0xe5   :  { %v240_v13 = vmax.f32 %v236_v10, 0.0 }
  0xe6   :  { %v241_v15 = vmax.f32 %v237_v11, 0.0 }
  0xe7   :  { %v242_v16 = vpack.c.bf16 %v240_v13, %v238_v12 }
  0xe8   :  { %v243_v17 = vpack.c.bf16 %v241_v15, %v239_v14 }
  0xea   :  { %411 = vmatprep.mubr.bf16.mxu1 %v243_v17 }
  0xeb   :  { %412 = vmatmul.mubr.bf16.vlgmr.msra.gmra.mrb[4].mxu1 %v242_v16 }
 0x1be   :  { %v595_v21 = vpop.f32.mrb[4].mxu1 }
 0x1bf   :  { %v596_v23 = vpop.f32.mrb[5].mxu1 }
 0x1c0   :  { %v597_v24 = vadd.f32 %v596_v23, %v595_v21  ;;  %v598_v25 = vpop.f32.mrb[6].mxu1 }
 0x1c1   :  { %v599_v26 = vpop.f32.mrb[7].mxu1 }
 0x1c2   :  { %v414_v27 = vadd.f32 %v597_v24, %v549_v22  ;;  %v600_v28 = vadd.f32 %v599_v26, %v598_v25 }
 0x1c4   :  { %v417_v30 = vadd.f32 %v600_v28, %v549_v22  ;;  %v420_v31 = vmax.f32 %v414_v27, 0.0 }
 0x1c6   :  { %v421_v32 = vmax.f32 %v417_v30, 0.0 }
 0x1c8   :  { %v422_v33 = vpack.c.bf16 %v421_v32, %v420_v31 }
 0x1ca   :  { %627 = vmatmul.mubr.bf16.vlgmr.msra.gmra.mrb[4].mxu0 %v422_v33 }
 0x29d   :  { %v528_v34 = vpop.f32.mrb[4].mxu0 }
 0x29e   :  { %v529_v35 = vadd.f32 %v566_v29, %v528_v34  ;;  %v628_v36 = vpop.f32.mrb[5].mxu0 }
 0x29f   :  { %v531_v37 = vpop.f32.mrb[6].mxu0 }
 0x2a0   :  { %535 = vst [vmem:[%s861_s11] sm:$0xff] %v529_v35  ;;  %v532_v38 = vadd.f32 %v566_v29, %v531_v37  ;;  %v629_v39 = vpop.f32.mrb[7].mxu0 }
 0x2a2   :  { %536 = vst [vmem:[%s861_s11 + $0x8] sm:$0xff] %v532_v38 }

</bundles_post_ra>
